<compile_context>
chip_gen: v7x
topology: tpu7x:2x2x1
jax: 0.10.0
libtpu: 0.0.40
codegen_flags: <defaults>
</compile_context>

<pallas_src>
import jax
import jax.numpy as jnp
from jax.experimental import pallas as pl
from jax.experimental.pallas import tpu as pltpu

_LANES = 128
_VMEM_LIMIT = 48 * 1024 * 1024          # scoped VMEM request (ok on v5e/v6e/v7x)
_VMEM_TILE_BUDGET = 36 * 1024 * 1024    # 2x input + 2x output double-buffers
_TARGET_TILE_BYTES = 4 * 1024 * 1024    # ~4 MiB input tile
_MAX_BLOCK_LANES = 16 * 1024            # lane-tile cap for very wide C


def _bn1d_kernel(x_ref, ss_ref, o_ref):
    # All math in float32, exactly as the PyTorch module does (input.float()).
    x = x_ref[...].astype(jnp.float32)          # (block_r, block_l)
    scale = ss_ref[0:1, :]                      # (1, block_l) f32
    shift = ss_ref[1:2, :]                      # (1, block_l) f32
    o_ref[...] = (x * scale + shift).astype(o_ref.dtype)


def _sublane_pack(itemsize):
    # native sublane packing: 8 for 32-bit, 16 for 16-bit, 32 for 8-bit dtypes
    return max(8, 32 // int(itemsize))


def _round_up(a, b):
    return ((a + b - 1) // b) * b


def _bn1d_pallas(x2, scale_row, shift_row, out_dtype):
    """Stream a 2-D (R, L) array through y = x*scale + shift."""
    R, L = x2.shape
    itemsize = jnp.dtype(x2.dtype).itemsize
    pack = _sublane_pack(itemsize)

    ss = jnp.stack([scale_row, shift_row], axis=0).astype(jnp.float32)  # (2, L)

    # Lane tiling only when L is very wide (and a 128-multiple, so splitting is
    # legal); otherwise the block minor dim equals the full array dim.
    if L % _LANES == 0 and L > _MAX_BLOCK_LANES:
        block_l = _MAX_BLOCK_LANES
    else:
        block_l = L
    row_bytes = max(1, block_l * itemsize)

    # Row tiling: ~4 MiB input tile, VMEM-budget capped, sublane-pack aligned.
    block_r = max(pack, min(_TARGET_TILE_BYTES // row_bytes,
                            _VMEM_TILE_BUDGET // (4 * row_bytes)))
    block_r = max(pack, (block_r // pack) * pack)
    if R > pack:
        # Ensure >=2 grid steps when there is enough work (v7x megacore).
        block_r = min(block_r, _round_up((R + 1) // 2, pack))
    if block_r >= R:
        block_r = R  # single block spanning all rows (legal: equals array dim)

    grid = (pl.cdiv(R, block_r), pl.cdiv(L, block_l))

    return pl.pallas_call(
        _bn1d_kernel,
        out_shape=jax.ShapeDtypeStruct((R, L), out_dtype),
        grid=grid,
        in_specs=[
            pl.BlockSpec((block_r, block_l), lambda i, j: (i, j)),  # x tile
            pl.BlockSpec((2, block_l), lambda i, j: (0, j)),        # scale/shift
        ],
        out_specs=pl.BlockSpec((block_r, block_l), lambda i, j: (i, j)),
        compiler_params=pltpu.CompilerParams(
            dimension_semantics=("parallel", "parallel"),
            vmem_limit_bytes=_VMEM_LIMIT,
        ),
    )(x2, ss)


def _batch_norm_1d_impl(x, running_mean, running_var, weight, bias, eps):
    """Eval-mode BatchNorm1d forward on channels-last (N, C) input."""
    N, C = x.shape
    out_dtype = x.dtype

    # Fold params to a single scale/shift (O(C) work, fused under jit):
    #   y = (x - mean) * rsqrt(var + eps) * w + b  ==  x * scale + shift
    mean = running_mean.astype(jnp.float32)
    var = running_var.astype(jnp.float32)
    w = (weight.astype(jnp.float32) if weight is not None
         else jnp.ones((C,), jnp.float32))
    b = (bias.astype(jnp.float32) if bias is not None
         else jnp.zeros((C,), jnp.float32))
    scale = w * jax.lax.rsqrt(var + eps)
    shift = b - mean * scale

    if C % _LANES == 0:
        # Channel axis already lane-dense: stream (N, C) directly, no copies.
        out = _bn1d_pallas(x, scale, shift, out_dtype)
    elif _LANES % C == 0:
        # Small power-of-two C: pack 128//C points per 128-lane row so every
        # vector store is fully dense. Pad N only when it does not divide the
        # packing factor (at most reps-1 rows).
        reps = _LANES // C
        if N % reps != 0:
            N_pad = _round_up(N, reps)
            x2 = jnp.pad(x, ((0, N_pad - N), (0, 0)))
        else:
            N_pad = N
            x2 = x
        R = (N_pad * C) // _LANES
        x2 = x2.reshape(R, _LANES)
        out = _bn1d_pallas(x2, jnp.tile(scale, reps), jnp.tile(shift, reps),
                           out_dtype)
        out = out.reshape(N_pad, C)
        if N_pad != N:
            out = out[:N]
    elif C >= _LANES:
        # C not a 128-multiple but large: use the full channel width as the
        # block minor dim (legal since it equals the array dim). Only the tail
        # vreg per row gets a masked store -- far cheaper than two extra HBM
        # passes from pad + slice.
        out = _bn1d_pallas(x, scale, shift, out_dtype)
    else:
        # Small C that neither divides nor is a multiple of 128: pad channels
        # up to one 128-lane vreg (rare for spconv feature widths).
        x2 = jnp.pad(x, ((0, 0), (0, _LANES - C)))
        out = _bn1d_pallas(x2,
                           jnp.pad(scale, (0, _LANES - C)),
                           jnp.pad(shift, (0, _LANES - C)),
                           out_dtype)
        out = out[:, :C]
    return out


_batch_norm_1d_jit = jax.jit(_batch_norm_1d_impl)


def batch_norm_1d(x, running_mean, running_var, weight, bias, eps=1e-5):
    return _batch_norm_1d_jit(x, running_mean, running_var, weight, bias, eps)


def batch_norm_1d_ref(x, running_mean, running_var, weight, bias, eps=1e-5):
    xf = x.astype(jnp.float32)
    y = (xf - running_mean) / jnp.sqrt(running_var + eps) * weight + bias
    return y.astype(x.dtype)


if __name__ == "__main__":
    num_features = 8   # C
    num_points = 32    # N (num sparse-conv points)

    key = jax.random.PRNGKey(0)
    kx, km, kv, kw, kb = jax.random.split(key, 5)

    x = jax.random.normal(kx, (num_points, num_features), dtype=jnp.float32)

    # Deterministic "trained" buffers/params (shapes per __init__: (num_features,))
    running_mean = jax.random.normal(km, (num_features,), dtype=jnp.float32) * 0.1
    running_var = jnp.abs(jax.random.normal(kv, (num_features,), dtype=jnp.float32)) + 0.5
    weight = 1.0 + 0.1 * jax.random.normal(kw, (num_features,), dtype=jnp.float32)
    bias = 0.1 * jax.random.normal(kb, (num_features,), dtype=jnp.float32)

    out = batch_norm_1d(x, running_mean, running_var, weight, bias, eps=1e-5)
    out = jax.block_until_ready(out)

    ref = batch_norm_1d_ref(x, running_mean, running_var, weight, bias, eps=1e-5)
    assert out.shape == x.shape and out.dtype == x.dtype
    assert jnp.allclose(out, ref, atol=1e-5, rtol=1e-5), "mismatch vs reference"

    print("KERNEL_OK")
</pallas_src>

<mosaic_0001>
module attributes {stable_mosaic.version = 11 : i64} {
  func.func @_bn1d_kernel(%arg0: i32, %arg1: i32, %arg2: memref<2x128xf32, #tpu.memory_space<vmem>>, %arg3: memref<2x128xf32, #tpu.memory_space<vmem>>, %arg4: memref<2x128xf32, #tpu.memory_space<vmem>>) attributes {dimension_semantics = [#tpu.dimension_semantics<parallel>, #tpu.dimension_semantics<parallel>], iteration_bounds = array<i64: 1, 1>, scalar_prefetch = 0 : i64, scratch_operands = 0 : i64, tpu.core_type = #tpu.core_type<tc>, window_params = [{transform_indices = @transform_0, window_bounds = array<i64: 2, 128>}, {transform_indices = @transform_1, window_bounds = array<i64: 2, 128>}, {transform_indices = @transform_2, window_bounds = array<i64: 2, 128>}]} {
    %c0 = arith.constant 0 : index
    %c0_0 = arith.constant 0 : index
    %0 = vector.load %arg2[%c0, %c0_0] : memref<2x128xf32, #tpu.memory_space<vmem>>, vector<2x128xf32>
    %c0_1 = arith.constant 0 : index
    %c0_2 = arith.constant 0 : index
    %1 = vector.load %arg3[%c0_1, %c0_2] : memref<2x128xf32, #tpu.memory_space<vmem>>, vector<1x128xf32>
    %c1 = arith.constant 1 : index
    %c0_3 = arith.constant 0 : index
    %2 = vector.load %arg3[%c1, %c0_3] : memref<2x128xf32, #tpu.memory_space<vmem>>, vector<1x128xf32>
    %3 = vector.broadcast %1 : vector<1x128xf32> to vector<2x128xf32>
    %4 = arith.mulf %0, %3 : vector<2x128xf32>
    %5 = vector.broadcast %2 : vector<1x128xf32> to vector<2x128xf32>
    %6 = arith.addf %4, %5 : vector<2x128xf32>
    %c0_4 = arith.constant 0 : index
    %c0_5 = arith.constant 0 : index
    %7 = vector.load %arg4[%c0_4, %c0_5] : memref<2x128xf32, #tpu.memory_space<vmem>>, vector<2x128xf32>
    tpu.vector_store %arg4[%c0_4, %c0_5], %6 {strides = array<i32>} : memref<2x128xf32, #tpu.memory_space<vmem>>, vector<2x128xf32>,
    return
  }
  func.func @transform_0(%arg0: i32, %arg1: i32) -> (i32, i32) {
    %c0_i32 = arith.constant 0 : i32
    return %arg0, %arg1 : i32, i32
  }
  func.func @transform_1(%arg0: i32, %arg1: i32) -> (i32, i32) {
    %c0_i32 = arith.constant 0 : i32
    %c0_i32_0 = arith.constant 0 : i32
    return %c0_i32, %arg1 : i32, i32
  }
  func.func @transform_2(%arg0: i32, %arg1: i32) -> (i32, i32) {
    %c0_i32 = arith.constant 0 : i32
    return %arg0, %arg1 : i32, i32
  }
}

</mosaic_0001>

<bundles_post_ra>
// kernel: tile.17
= control target key start
LH: loop header
LB: loop body
LE: loop exit
PB: predicated region body
PF: predicated region fallthrough
CT: control target
= control target key end

     0   :  { %s28_s0 = inlined_call_operand.vmem [shape: f32[8], index: 0, kind: input, shape index: {}]   ;;  %s29_s1 = inlined_call_operand.vmem [shape: f32[16,8], index: 1, kind: output, shape index: {}]  }
   0x1   :  { %v4_v0 = vld [vmem:[%s28_s0] ss:$0 sm:$0xff] }
   0x2   :  { %5 = vst [vmem:[%s29_s1] sm:$0xff] %v4_v0  ;;  %8 = vst [vmem:[%s29_s1 + $0x8] sm:$0xff] %v4_v0 }

// kernel: tile.19
= control target key start
LH: loop header
LB: loop body
LE: loop exit
PB: predicated region body
PF: predicated region fallthrough
CT: control target
= control target key end

     0   :  { %s131_s10 = smov 120   ;;  %s132_s11 = smov 104   ;;  %vm3_vm0 = vcmask 64512   ;;  %vm9_vm1 = vcmask 1048512   ;;  %vm15_vm2 = vcmask 982912   ;;  %vm21_vm3 = vcmask 917312   ;;  %s207_s0 = inlined_call_operand.vmem [shape: f32[16,8], index: 0, kind: input, shape index: {}]   ;;  %s208_s1 = inlined_call_operand.vmem [shape: f32[1,128], index: 1, kind: output, shape index: {}]  }
   0x1   :  { %v101_v0 = vld [vmem:[%s207_s0 + $0xf] sm:$0x1]   ;;  %v103_v1 = vld [vmem:[%s207_s0 + $0xd] sm:$0x1]   ;;  %v102_v2 = vld [vmem:[%s207_s0 + $0xe] sm:$0x1]  }
   0x2   :  { %7 = vrot.lane.b32.xlu0 %v101_v0, %s131_s10  ;;  %19 = vrot.lane.b32.xlu1 %v103_v1, %s132_s11  ;;  %v104_v3 = vld [vmem:[%s207_s0 + $0xc] sm:$0x1]   ;;  %s133_s16 = smov 112   ;;  %s134_s17 = smov 96   ;;  %v105_v4 = vld [vmem:[%s207_s0 + $0xb] sm:$0x1]  }
   0x3   :  { %v106_v5 = vld [vmem:[%s207_s0 + $0xa] sm:$0x1]   ;;  %v2_v6 = vld [vmem:[%s207_s0] sm:$0x1]   ;;  %s135_s24 = smov 88   ;;  %s136_s25 = smov 80  }
   0x4   :  { %4 = vst.msk [vmem:[#allocation0] sm:$0x1] %vm3_vm0, %v2_v6   ;;  %v107_v7 = vld [vmem:[%s207_s0 + $0x9] sm:$0x1]   ;;  %v108_v8 = vld [vmem:[%s207_s0 + $0x8] sm:$0x1]  }
   0x5   :  { %s137_s30 = smov 72   ;;  %s138_s2 = smov 64   ;;  %v109_v9 = vld [vmem:[%s207_s0 + $0x7] sm:$0x1]   ;;  %v110_v10 = vld [vmem:[%s207_s0 + $0x6] sm:$0x1]  }
   0x6   :  { %13 = vrot.lane.b32.xlu0 %v102_v2, %s133_s16  ;;  %25 = vrot.lane.b32.xlu1 %v104_v3, %s134_s17  ;;  %s139_s7 = smov 56   ;;  %s140_s8 = smov 48   ;;  %v111_v11 = vld [vmem:[%s207_s0 + $0x5] sm:$0x1]   ;;  %v112_v12 = vld [vmem:[%s207_s0 + $0x4] sm:$0x1]  }
   0x7   :  { %s141_s13 = smov 40   ;;  %s142_s14 = smov 32   ;;  %v113_v13 = vld [vmem:[%s207_s0 + $0x3] sm:$0x1]   ;;  %v114_v14 = vld [vmem:[%s207_s0 + $0x2] sm:$0x1]  }
   0x8   :  { %s143_s19 = smov 24   ;;  %s144_s20 = smov 16   ;;  %v115_v15 = vld [vmem:[%s207_s0 + $0x1] sm:$0x1]   ;;  %vm27_vm4 = vcmask 851712   ;;  %vm33_vm5 = vcmask 786112  }
   0x9   :  { %s145_s0 = smov 8   ;;  %vm39_vm6 = vcmask 720512   ;;  %vm45_vm7 = vcmask 654912   ;;  %vm51_vm8 = vcmask 589312   ;;  %vm57_vm9 = vcmask 523712  }
   0xa   :  { %31 = vrot.lane.b32.xlu0 %v105_v4, %s135_s24  ;;  %37 = vrot.lane.b32.xlu1 %v106_v5, %s136_s25  ;;  %vm63_vm10 = vcmask 458112   ;;  %vm69_vm11 = vcmask 392512   ;;  %vm75_vm12 = vcmask 326912   ;;  %vm81_vm13 = vcmask 261312  }
   0xb   :  { %vm87_vm14 = vcmask 195712   ;;  %vm93_vm15 = vcmask 130112  }
   0xe   :  { %43 = vrot.lane.b32.xlu0 %v107_v7, %s137_s30  ;;  %49 = vrot.lane.b32.xlu1 %v108_v8, %s138_s2 }
  0x12   :  { %55 = vrot.lane.b32.xlu0 %v109_v9, %s139_s7  ;;  %61 = vrot.lane.b32.xlu1 %v110_v10, %s140_s8 }
  0x16   :  { %67 = vrot.lane.b32.xlu0 %v111_v11, %s141_s13  ;;  %73 = vrot.lane.b32.xlu1 %v112_v12, %s142_s14 }
  0x1a   :  { %79 = vrot.lane.b32.xlu0 %v113_v13, %s143_s19  ;;  %85 = vrot.lane.b32.xlu1 %v114_v14, %s144_s20 }
  0x1e   :  { %91 = vrot.lane.b32.xlu0 %v115_v15, %s145_s0 }
  0x74   :  { %v8_v16 = vpop.permute.xlu0 %7   ;;  %v20_v17 = vpop.permute.xlu1 %19  }
  0x75   :  { %10 = vst.msk [vmem:[#allocation0] sm:$0x1] %vm9_vm1, %v8_v16  }
  0x78   :  { %v14_v18 = vpop.permute.xlu0 %13   ;;  %v26_v19 = vpop.permute.xlu1 %25  }
  0x79   :  { %16 = vst.msk [vmem:[#allocation0] sm:$0x1] %vm15_vm2, %v14_v18  }
  0x7a   :  { %22 = vst.msk [vmem:[#allocation0] sm:$0x1] %vm21_vm3, %v20_v17  }
  0x7b   :  { %28 = vst.msk [vmem:[#allocation0] sm:$0x1] %vm27_vm4, %v26_v19  }
  0x7c   :  { %v32_v20 = vpop.permute.xlu0 %31   ;;  %v38_v21 = vpop.permute.xlu1 %37  }
  0x7d   :  { %34 = vst.msk [vmem:[#allocation0] sm:$0x1] %vm33_vm5, %v32_v20  }
  0x7e   :  { %40 = vst.msk [vmem:[#allocation0] sm:$0x1] %vm39_vm6, %v38_v21  }
  0x80   :  { %v44_v22 = vpop.permute.xlu0 %43   ;;  %v50_v23 = vpop.permute.xlu1 %49  }
  0x81   :  { %46 = vst.msk [vmem:[#allocation0] sm:$0x1] %vm45_vm7, %v44_v22  }
  0x82   :  { %52 = vst.msk [vmem:[#allocation0] sm:$0x1] %vm51_vm8, %v50_v23  }
  0x84   :  { %v56_v24 = vpop.permute.xlu0 %55   ;;  %v62_v25 = vpop.permute.xlu1 %61  }
  0x85   :  { %58 = vst.msk [vmem:[#allocation0] sm:$0x1] %vm57_vm9, %v56_v24  }
  0x86   :  { %64 = vst.msk [vmem:[#allocation0] sm:$0x1] %vm63_vm10, %v62_v25  }
  0x88   :  { %v68_v26 = vpop.permute.xlu0 %67   ;;  %v74_v27 = vpop.permute.xlu1 %73  }
  0x89   :  { %70 = vst.msk [vmem:[#allocation0] sm:$0x1] %vm69_vm11, %v68_v26  }
  0x8a   :  { %76 = vst.msk [vmem:[#allocation0] sm:$0x1] %vm75_vm12, %v74_v27  }
  0x8c   :  { %v80_v28 = vpop.permute.xlu0 %79   ;;  %v86_v29 = vpop.permute.xlu1 %85  }
  0x8d   :  { %82 = vst.msk [vmem:[#allocation0] sm:$0x1] %vm81_vm13, %v80_v28  }
  0x8e   :  { %88 = vst.msk [vmem:[#allocation0] sm:$0x1] %vm87_vm14, %v86_v29  }
  0x90   :  { %v92_v30 = vpop.permute.xlu0 %91  }
  0x91   :  { %94 = vst.msk [vmem:[#allocation0] sm:$0x1] %vm93_vm15, %v92_v30  }
  0x98   :  { %v98_v31 = vld [vmem:[#allocation0] sm:$0x1] }
  0x99   :  { %100 = vst [vmem:[%s208_s1] sm:$0x1] %v98_v31 }

// kernel: _batch_norm_1d_impl.1
= control target key start
LH: loop header
LB: loop body
LE: loop exit
PB: predicated region body
PF: predicated region fallthrough
CT: control target
= control target key end

     0   :  { %s58_s0 = inlined_call_operand.vmem [shape: f32[2,128], index: 0, kind: input, shape index: {}]   ;;  %s59_s1 = inlined_call_operand.vmem [shape: f32[2,128], index: 1, kind: input, shape index: {}]   ;;  %s60_s2 = inlined_call_operand.vmem [shape: f32[2,128], index: 2, kind: output, shape index: {}]  }
   0x1   :  { %v11_v0 = vld [vmem:[%s58_s0] sm:$0x3] }
   0x2   :  { %v29_v1 = vld [vmem:[%s59_s1] ss:$0 sm:$0xff]  ;;  %v30_v2 = vld [vmem:[%s59_s1 + $0x1] ss:$0 sm:$0xff] }
   0x3   :  { %v18_v3 = vmul.f32 %v29_v1, %v11_v0 }
   0x5   :  { %v23_v4 = vadd.f32 %v30_v2, %v18_v3 }
   0x7   :  { %24 = vst [vmem:[%s60_s2] sm:$0x3] %v23_v4 }

</bundles_post_ra>
